<compile_context>
chip_gen: v5e
topology: v5e:2x2
jax: 0.10.0
libtpu: 0.0.40
codegen_flags: <defaults>
</compile_context>

<pallas_src>
import functools

import jax
import jax.numpy as jnp
from jax.experimental import pallas as pl
from jax.experimental.pallas import tpu as pltpu


def _bce_with_logits(x, t):
    # numerically-stable BCE with logits, matching
    # torch.nn.functional.binary_cross_entropy_with_logits
    return jnp.maximum(x, 0.0) - x * t + jnp.log1p(jnp.exp(-jnp.abs(x)))


# --------------------- reduce path kernels (write partial sums) ---------------------


def _partial_sums_kernel_idx(x_ref, tgt_ref, out_ref, *, on_val, off_val, block_n,
                             b_total, n_total, mask_b, mask_n, fold):
    i = pl.program_id(0)
    j = pl.program_id(1)
    x = x_ref[...].astype(jnp.float32)
    bb, bn = x.shape
    cls = j * block_n + jax.lax.broadcasted_iota(jnp.int32, (bb, bn), 1)
    t = jnp.where(cls == tgt_ref[...], jnp.float32(on_val), jnp.float32(off_val))
    loss = _bce_with_logits(x, t)

    mask = None
    if mask_b:
        rows = i * bb + jax.lax.broadcasted_iota(jnp.int32, (bb, bn), 0)
        mask = rows < b_total
    if mask_n:
        ok = cls < n_total
        mask = ok if mask is None else (mask & ok)
    if mask is not None:
        loss = jnp.where(mask, loss, jnp.float32(0.0))

    if fold:
        # (bb, bn) -> (bb//8, 8, bn) is layout-free; sum over the leading dim is
        # pure VPU adds. The cross-lane reduce is deferred to XLA on the partials.
        out_ref[...] = loss.reshape(bb // 8, 8, bn).sum(axis=0)
    else:
        out_ref[...] = jnp.sum(loss, axis=0, keepdims=True)


def _partial_sums_kernel_dense(x_ref, tgt_ref, out_ref, *, off_val, block_n,
                               b_total, n_total, mask_b, mask_n, fold):
    i = pl.program_id(0)
    j = pl.program_id(1)
    x = x_ref[...].astype(jnp.float32)
    bb, bn = x.shape
    t = jnp.maximum(tgt_ref[...].astype(jnp.float32), jnp.float32(off_val))
    loss = _bce_with_logits(x, t)

    mask = None
    if mask_b:
        rows = i * bb + jax.lax.broadcasted_iota(jnp.int32, (bb, bn), 0)
        mask = rows < b_total
    if mask_n:
        cols = j * block_n + jax.lax.broadcasted_iota(jnp.int32, (bb, bn), 1)
        ok = cols < n_total
        mask = ok if mask is None else (mask & ok)
    if mask is not None:
        loss = jnp.where(mask, loss, jnp.float32(0.0))

    if fold:
        out_ref[...] = loss.reshape(bb // 8, 8, bn).sum(axis=0)
    else:
        out_ref[...] = jnp.sum(loss, axis=0, keepdims=True)


# --------------------------- reduction='none' kernels -------------------------------


def _elementwise_kernel_idx(x_ref, tgt_ref, out_ref, *, on_val, off_val, block_n):
    j = pl.program_id(1)
    x = x_ref[...].astype(jnp.float32)
    bb, bn = x.shape
    cls = j * block_n + jax.lax.broadcasted_iota(jnp.int32, (bb, bn), 1)
    t = jnp.where(cls == tgt_ref[...], jnp.float32(on_val), jnp.float32(off_val))
    out_ref[...] = _bce_with_logits(x, t).astype(out_ref.dtype)


def _elementwise_kernel_dense(x_ref, tgt_ref, out_ref, *, off_val):
    x = x_ref[...].astype(jnp.float32)
    t = jnp.maximum(tgt_ref[...].astype(jnp.float32), jnp.float32(off_val))
    out_ref[...] = _bce_with_logits(x, t).astype(out_ref.dtype)


# ----------------------------------- helpers ----------------------------------------


def _vmem_limits():
    """(scoped vmem limit to request, byte budget for pipelined input/output tiles)."""
    phys = 64 * 1024 * 1024  # conservative default: v7x per-core physical VMEM
    try:
        cap = getattr(pltpu.get_tpu_info(), "vmem_capacity_bytes", None)
        if cap:
            phys = int(cap)
    except Exception:
        pass
    # v5e/v6e (128 MiB physical) -> 96 MiB scoped limit, 48 MiB tile budget.
    # v7x (64 MiB physical)      -> 48 MiB scoped limit, 24 MiB tile budget.
    limit = min((phys * 3) // 4, 96 * 1024 * 1024)
    return int(limit), int(limit) // 2


def _choose_blocks(B, N, bytes_per_elem, budget):
    """Pick (block_b, block_n): lane axis tiled at <=2048, batch axis sized so that
    double-buffered tiles fill ~the budget (multiple of 8, never a single huge
    whole-array fallback tile)."""
    block_n = N if N <= 2048 else 2048          # 2048 is a multiple of 128
    rows = max(8, budget // max(1, 2 * block_n * bytes_per_elem))
    if B >= 8:
        block_b = max(8, min((rows // 8) * 8, (B // 8) * 8))
    else:
        block_b = B                             # full (tiny) batch dim
    return block_b, block_n


# ----------------------------------- wrapper ----------------------------------------


def uniform_off_labels_bce_with_logits_loss(x, target, *, reduction="mean",
                                            off_label=None):
    """Forward pass of UniformOffLabelsBCEWithLogitsLoss (no stateful params)."""
    assert x.ndim == 2, "kernel supports (B, N) logits"
    B, N = x.shape
    assert target.shape[0] == B
    # NOTE: `off_label or 1/N` intentionally mirrors the PyTorch module, so an
    # explicit off_label of 0.0 silently falls back to 1/N (same as the reference).
    off_value = off_label or 1.0 / N
    # torch does one_hot(t).clamp(min=off): on -> max(1, off), off -> max(0, off)
    on_val = max(1.0, off_value)
    off_val = max(0.0, off_value)

    dense = target.shape == x.shape
    if not dense:
        assert target.ndim == 1, "index targets must be (B,)"
        tgt = target.astype(jnp.int32).reshape(B, 1)
    else:
        tgt = target

    vmem_limit, budget = _vmem_limits()
    x_bytes = jnp.dtype(x.dtype).itemsize
    t_bytes = jnp.dtype(tgt.dtype).itemsize

    if reduction in ("mean", "sum"):
        per_elem = x_bytes + (t_bytes if dense else 0)
        block_b, block_n = _choose_blocks(B, N, per_elem, budget)
        nb_b = pl.cdiv(B, block_b)
        nb_n = pl.cdiv(N, block_n)
        mask_b = (B % block_b) != 0
        mask_n = (N % block_n) != 0
        fold = (block_b % 8) == 0
        rows_out = 8 if fold else 1

        x_spec = pl.BlockSpec((block_b, block_n), lambda i, j: (i, j))
        if dense:
            t_spec = pl.BlockSpec((block_b, block_n), lambda i, j: (i, j))
            kern = functools.partial(
                _partial_sums_kernel_dense, off_val=off_val, block_n=block_n,
                b_total=B, n_total=N, mask_b=mask_b, mask_n=mask_n, fold=fold)
        else:
            t_spec = pl.BlockSpec((block_b, 1), lambda i, j: (i, 0))
            kern = functools.partial(
                _partial_sums_kernel_idx, on_val=on_val, off_val=off_val,
                block_n=block_n, b_total=B, n_total=N,
                mask_b=mask_b, mask_n=mask_n, fold=fold)

        out_h = nb_b * rows_out
        out_w = nb_n * block_n
        cost = pl.CostEstimate(
            flops=6 * B * N,
            transcendentals=2 * B * N,
            bytes_accessed=B * N * x_bytes + tgt.size * t_bytes + out_h * out_w * 4)

        partials = pl.pallas_call(
            kern,
            out_shape=jax.ShapeDtypeStruct((out_h, out_w), jnp.float32),
            grid_spec=pltpu.PrefetchScalarGridSpec(
                num_scalar_prefetch=0,
                grid=(nb_b, nb_n),
                in_specs=[x_spec, t_spec],
                out_specs=pl.BlockSpec((rows_out, block_n), lambda i, j: (i, j)),
            ),
            compiler_params=pltpu.CompilerParams(
                dimension_semantics=("parallel", "parallel"),
                vmem_limit_bytes=vmem_limit),
            cost_estimate=cost,
        )(x, tgt)

        total = jnp.sum(partials)               # tiny final reduce in XLA
        if reduction == "mean":
            total = total / (B * N)
        return total.astype(x.dtype)

    elif reduction == "none":
        # TODO(synk): for N << 128 a lane-dense (B*N/128, 128) output slab would avoid
        # masked vst stores, but it changes the caller-visible layout; left as-is.
        per_elem = 2 * x_bytes + (t_bytes if dense else 0)  # in + out (+ dense tgt)
        block_b, block_n = _choose_blocks(B, N, per_elem, budget)
        nb_b = pl.cdiv(B, block_b)
        nb_n = pl.cdiv(N, block_n)

        x_spec = pl.BlockSpec((block_b, block_n), lambda i, j: (i, j))
        if dense:
            t_spec = pl.BlockSpec((block_b, block_n), lambda i, j: (i, j))
            kern = functools.partial(_elementwise_kernel_dense, off_val=off_val)
        else:
            t_spec = pl.BlockSpec((block_b, 1), lambda i, j: (i, 0))
            kern = functools.partial(_elementwise_kernel_idx, on_val=on_val,
                                     off_val=off_val, block_n=block_n)

        cost = pl.CostEstimate(
            flops=6 * B * N,
            transcendentals=2 * B * N,
            bytes_accessed=B * N * x_bytes + tgt.size * t_bytes + B * N * x_bytes)

        return pl.pallas_call(
            kern,
            out_shape=jax.ShapeDtypeStruct((B, N), x.dtype),
            grid_spec=pltpu.PrefetchScalarGridSpec(
                num_scalar_prefetch=0,
                grid=(nb_b, nb_n),
                in_specs=[x_spec, t_spec],
                out_specs=pl.BlockSpec((block_b, block_n), lambda i, j: (i, j)),
            ),
            compiler_params=pltpu.CompilerParams(
                dimension_semantics=("parallel", "parallel"),
                vmem_limit_bytes=vmem_limit),
            cost_estimate=cost,
        )(x, tgt)
    else:
        raise ValueError(f"unsupported reduction: {reduction}")


# ----------------------------------- reference --------------------------------------


def _reference(x, target, reduction="mean", off_label=None):
    N = x.shape[-1]
    off = off_label or 1.0 / N
    if target.shape != x.shape:
        t = jax.nn.one_hot(target, N, dtype=x.dtype)
    else:
        t = target
    t = jnp.maximum(t, off)  # clamp(min=off)
    loss = jnp.maximum(x, 0.0) - x * t + jnp.log1p(jnp.exp(-jnp.abs(x)))
    if reduction == "mean":
        return jnp.mean(loss)
    if reduction == "sum":
        return jnp.sum(loss)
    return loss


if __name__ == "__main__":
    key = jax.random.PRNGKey(0)
    kx, kt, kd, kx2, kt2 = jax.random.split(key, 5)
    B, N = 16, 32
    x = jax.random.normal(kx, (B, N), dtype=jnp.float32)
    target_idx = jax.random.randint(kt, (B,), 0, N, dtype=jnp.int32)
    target_dense = jax.random.uniform(kd, (B, N), dtype=jnp.float32)

    # 1) default: mean reduction, off label = 1/N, integer class targets
    loss = jax.block_until_ready(
        uniform_off_labels_bce_with_logits_loss(x, target_idx, reduction="mean"))
    ref = _reference(x, target_idx, reduction="mean")
    assert jnp.allclose(loss, ref, atol=1e-5, rtol=1e-5), (loss, ref)

    # 2) explicit off_label + sum reduction
    loss2 = jax.block_until_ready(
        uniform_off_labels_bce_with_logits_loss(x, target_idx, reduction="sum",
                                                off_label=2e-3))
    ref2 = _reference(x, target_idx, reduction="sum", off_label=2e-3)
    assert jnp.allclose(loss2, ref2, atol=1e-4, rtol=1e-5), (loss2, ref2)

    # 3) dense (already soft) targets, mean reduction
    loss3 = jax.block_until_ready(
        uniform_off_labels_bce_with_logits_loss(x, target_dense, reduction="mean"))
    ref3 = _reference(x, target_dense, reduction="mean")
    assert jnp.allclose(loss3, ref3, atol=1e-5, rtol=1e-5), (loss3, ref3)

    # 4) reduction="none" path (elementwise output)
    loss4 = jax.block_until_ready(
        uniform_off_labels_bce_with_logits_loss(x, target_idx, reduction="none"))
    ref4 = _reference(x, target_idx, reduction="none")
    assert jnp.allclose(loss4, ref4, atol=1e-5, rtol=1e-5)

    # 5) non-divisible B and N (exercises 2-D grid + tail masking), idx targets
    B2, N2 = 20, 2200
    x2 = jax.random.normal(kx2, (B2, N2), dtype=jnp.float32)
    target_idx2 = jax.random.randint(kt2, (B2,), 0, N2, dtype=jnp.int32)
    loss5 = jax.block_until_ready(
        uniform_off_labels_bce_with_logits_loss(x2, target_idx2, reduction="mean"))
    ref5 = _reference(x2, target_idx2, reduction="mean")
    assert jnp.allclose(loss5, ref5, atol=1e-5, rtol=1e-4), (loss5, ref5)

    print("KERNEL_OK")
</pallas_src>

<mosaic_0001>
module attributes {stable_mosaic.version = 11 : i64} {
  func.func @_partial_sums_kernel_idx(%arg0: i32, %arg1: i32, %arg2: memref<16x32xf32, #tpu.memory_space<vmem>>, %arg3: memref<16x1xi32, #tpu.memory_space<vmem>>, %arg4: memref<8x32xf32, #tpu.memory_space<vmem>>) attributes {dimension_semantics = [#tpu.dimension_semantics<parallel>, #tpu.dimension_semantics<parallel>], iteration_bounds = array<i64: 1, 1>, scalar_prefetch = 0 : i64, scratch_operands = 0 : i64, tpu.core_type = #tpu.core_type<tc>, window_params = [{transform_indices = @transform_0, window_bounds = array<i64: 16, 32>}, {transform_indices = @transform_1, window_bounds = array<i64: 16, 1>}, {transform_indices = @transform_2, window_bounds = array<i64: 8, 32>}]} {
    %c0 = arith.constant 0 : index
    %c0_0 = arith.constant 0 : index
    %0 = vector.load %arg2[%c0, %c0_0] : memref<16x32xf32, #tpu.memory_space<vmem>>, vector<16x32xf32>
    %c32_i32 = arith.constant 32 : i32
    %1 = arith.muli %arg1, %c32_i32 : i32
    %2 = tpu.iota {dimensions = array<i32: 1>} : vector<16x32xi32>
    %3 = vector.broadcast %1 : i32 to vector<16x32xi32>
    %4 = arith.addi %3, %2 : vector<16x32xi32>
    %c0_1 = arith.constant 0 : index
    %c0_2 = arith.constant 0 : index
    %5 = vector.load %arg3[%c0_1, %c0_2] : memref<16x1xi32, #tpu.memory_space<vmem>>, vector<16x1xi32>
    %6 = vector.broadcast %5 : vector<16x1xi32> to vector<16x32xi32>
    %7 = arith.cmpi eq, %4, %6 : vector<16x32xi32>
    %cst = arith.constant 1.000000e+00 : f32
    %cst_3 = arith.constant 3.125000e-02 : f32
    %8 = vector.broadcast %cst : f32 to vector<16x32xf32>
    %9 = vector.broadcast %cst_3 : f32 to vector<16x32xf32>
    %10 = arith.select %7, %8, %9 : vector<16x32xi1>, vector<16x32xf32>
    %cst_4 = arith.constant 0.000000e+00 : f32
    %11 = vector.broadcast %cst_4 : f32 to vector<16x32xf32>
    %12 = arith.maximumf %0, %11 : vector<16x32xf32>
    %13 = arith.mulf %0, %10 : vector<16x32xf32>
    %14 = arith.subf %12, %13 : vector<16x32xf32>
    %15 = math.absf %0 : vector<16x32xf32>
    %cst_5 = arith.constant 0.000000e+00 : f32
    %16 = vector.broadcast %cst_5 : f32 to vector<16x32xf32>
    %17 = arith.subf %16, %15 : vector<16x32xf32>
    %18 = math.exp %17 : vector<16x32xf32>
    %19 = math.log1p %18 : vector<16x32xf32>
    %20 = arith.addf %14, %19 : vector<16x32xf32>
    %21 = vector.shape_cast %20 : vector<16x32xf32> to vector<2x8x32xf32>
    %cst_6 = arith.constant dense<0.000000e+00> : vector<8x32xf32>
    %22 = vector.multi_reduction <add>, %21, %cst_6 [0] : vector<2x8x32xf32> to vector<8x32xf32>
    %c0_7 = arith.constant 0 : index
    %c0_8 = arith.constant 0 : index
    %23 = vector.load %arg4[%c0_7, %c0_8] : memref<8x32xf32, #tpu.memory_space<vmem>>, vector<8x32xf32>
    tpu.vector_store %arg4[%c0_7, %c0_8], %22 {strides = array<i32>} : memref<8x32xf32, #tpu.memory_space<vmem>>, vector<8x32xf32>,
    return
  }
  func.func @transform_0(%arg0: i32, %arg1: i32) -> (i32, i32) {
    %c0_i32 = arith.constant 0 : i32
    return %arg0, %arg1 : i32, i32
  }
  func.func @transform_1(%arg0: i32, %arg1: i32) -> (i32, i32) {
    %c0_i32 = arith.constant 0 : i32
    %c0_i32_0 = arith.constant 0 : i32
    return %arg0, %c0_i32 : i32, i32
  }
  func.func @transform_2(%arg0: i32, %arg1: i32) -> (i32, i32) {
    %c0_i32 = arith.constant 0 : i32
    return %arg0, %arg1 : i32, i32
  }
}

</mosaic_0001>

<bundles_post_ra>
// kernel: tpu_custom_call.1
= control target key start
LH: loop header
LB: loop body
LE: loop exit
PB: predicated region body
PF: predicated region fallthrough
CT: control target
= control target key end

     0   :  { %s157_s0 = inlined_call_operand.vmem [shape: f32[16,32], index: 0, kind: input, shape index: {}]   ;;  %s158_s1 = inlined_call_operand.vmem [shape: s32[16,1], index: 1, kind: input, shape index: {}]   ;;  %s159_s2 = inlined_call_operand.hbm [shape: f32[8,32], index: 2, kind: output, shape index: {}]  }
   0x1   :  { %v19_v0 = vld [vmem:[%s158_s1] sm:$0xff] }
   0x2   :  { %7 = vsyncpa [#allocation3], 0  ;;  %v124_v1 = vmov 0   ;;  %v20_v2 = vld [vmem:[%s158_s1 + $0x8] sm:$0xff]  ;;  %v12_v3 = vld [vmem:[%s157_s0] sm:$0xff]  ;;  %v15_v13 = vlaneseq  ;;  %v125_v20 = vmov 0.03125  }
   0x3   :  { %89 = vset.pattern.permute.xlu0 %v124_v1  ;;  %v13_v4 = vld [vmem:[%s157_s0 + $0x8] sm:$0xff]  ;;  %v37_v5 = vand.u32 2147483647, %v12_v3  ;;  %v31_v27 = vmax.f32 %v12_v3, 0.0  ;;  %vm65_vm4 = vcmask 261120   ;;  %s126_s0 = smov [#allocation2]  }
   0x4   :  { %22 = vperm.xlu0 %89, %v19_v0   ;;  %v38_v6 = vand.u32 2147483647, %v13_v4  ;;  %v16_v16 = vand.u32 127, %v15_v13  ;;  %v32_v36 = vmax.f32 %v13_v4, 0.0  ;;  %s75_s1 = sshll.u32 %s126_s0, 4  ;;  %s77_s19 = sshll.u32 %s159_s2, 4  ;;  %s76_s1 = int_to_ptr.vmem [resolvable:$true] %s75_s1  ;;  %s78_s19 = int_to_ptr.hbm [resolvable:$true] %s77_s19 }
   0x5   :  { %v39_v7 = vsub.f32 0.0, %v37_v5 }
   0x6   :  { %v40_v8 = vsub.f32 0.0, %v38_v6 }
   0x7   :  { %v41_v9 = vmul.f32 1.442695, %v39_v7 }
   0x8   :  { %v43_v10 = vmul.f32 1.442695, %v40_v8 }
   0x9   :  { %90 = vpow2.f32 %v41_v9 }
   0xa   :  { %92 = vpow2.f32 %v43_v10 }
   0xc   :  { %25 = vperm.xlu0 %89, %v20_v2  }
   0xf   :  { %v91_v11 = vpop.eup %90 }
  0x10   :  { %v93_v12 = vpop.eup %92  ;;  %v45_v14 = vadd.f32 1.0, %v91_v11  ;;  %v48_v17 = vmul.f32 -0.5, %v91_v11  ;;  %v51_v24 = vand.u32 2147483647, %v91_v11 }
  0x11   :  { %v54_v15 = vadd.f32 1.0, %v93_v12  ;;  %v57_v19 = vmul.f32 -0.5, %v93_v12  ;;  %v60_v29 = vand.u32 2147483647, %v93_v12 }
  0x12   :  { %94 = vlog2.f32 %v45_v14  ;;  %v49_v22 = vadd.f32 1.0, %v48_v17  ;;  %vm52_vm1 = vcmp.lt.f32.partialorder %v51_v24, 0.0004427343 }
  0x13   :  { %96 = vlog2.f32 %v54_v15  ;;  %v58_v25 = vadd.f32 1.0, %v57_v19  ;;  %vm61_vm3 = vcmp.lt.f32.partialorder %v60_v29, 0.0004427343 }
  0x14   :  { %v50_v31 = vmul.f32 %v91_v11, %v49_v22 }
  0x15   :  { %v59_v34 = vmul.f32 %v93_v12, %v58_v25 }
  0x18   :  { %v95_v23 = vpop.eup %94 }
  0x19   :  { %v97_v26 = vpop.eup %96  ;;  %v47_v30 = vmul.f32 0.6931472, %v95_v23 }
  0x1a   :  { %v56_v33 = vmul.f32 0.6931472, %v97_v26 }
  0x1b   :  { %v53_v37 = vsel %vm52_vm1, %v50_v31, %v47_v30 }
  0x1c   :  { %v62_v40 = vsel %vm61_vm3, %v59_v34, %v56_v33 }
  0x76   :  { %v23_v18 = vpop.permute.xlu0 %22 }
  0x77   :  { %vm27_vm0 = vcmp.eq.s32.totalorder %v16_v16, %v23_v18 }
  0x78   :  { %v29_v21 = vsel %vm27_vm0, 1.0, %v125_v20 }
  0x79   :  { %v33_v28 = vmul.f32 %v29_v21, %v12_v3 }
  0x7b   :  { %v35_v35 = vsub.f32 %v31_v27, %v33_v28 }
  0x7d   :  { %v63_v41 = vadd.f32 %v53_v37, %v35_v35 }
  0x7e   :  { %v26_v32 = vpop.permute.xlu0 %25 }
  0x7f   :  { %vm28_vm2 = vcmp.eq.s32.totalorder %v16_v16, %v26_v32  ;;  %v66_v44 = vsel %vm65_vm4, %v63_v41, 0.0 }
  0x80   :  { %v30_v38 = vsel %vm28_vm2, 1.0, %v125_v20 }
  0x81   :  { %v34_v39 = vmul.f32 %v30_v38, %v13_v4 }
  0x83   :  { %v36_v42 = vsub.f32 %v32_v36, %v34_v39 }
  0x85   :  { %v64_v43 = vadd.f32 %v62_v40, %v36_v42 }
  0x87   :  { %v67_v45 = vsel %vm65_vm4, %v64_v43, 0.0 }
  0x88   :  { %v68_v46 = vadd.f32 %v67_v45, %v66_v44 }
  0x8a   :  { %69 = vst.msk [vmem:[#allocation2] sm:$0xff] %vm65_vm4, %v68_v46 }
  0x8b   :  { %80 = dma.vmem_to_hbm [thread:$0]  %s76_s1, 128, %s78_s19, [#allocation3]  }
  0x8c   :  { %122 = dma.done.wait [#allocation3], 128  }
  0x8d   :  { %123 = vsyncadd [#allocation3], 4294967168 }
  0x8e   :  { %85 = vsyncpa [#allocation3], 1 }

</bundles_post_ra>
